<compile_context>
chip_gen: v7x
topology: tpu7x:2x2x1
jax: 0.10.0
libtpu: 0.0.40
codegen_flags: <defaults>
</compile_context>

<pallas_src>
import jax
import jax.numpy as jnp
from jax.experimental import pallas as pl
from jax.experimental.pallas import tpu as pltpu


def ca_kernel(x_ref, w1t_ref, b1_ref, w2t_ref, b2_ref, o_ref):
    # x block: (D, TILE_B) -- features on sublanes, batch on lanes (lane-dense).
    x = x_ref[...].astype(jnp.float32)
    w1t = w1t_ref[...].astype(jnp.float32)   # (H, D)
    b1 = b1_ref[...].astype(jnp.float32)     # (H, 1)
    w2t = w2t_ref[...].astype(jnp.float32)   # (D, H)
    b2 = b2_ref[...].astype(jnp.float32)     # (D, 1)

    d, tb = x.shape
    h_dim = w1t.shape[0]

    # ---- Linear(dim -> 4*dim) + ReLU, unrolled over the K=5 contraction ----
    # h[j, :] = b1[j] + sum_i w1t[j, i] * x[i, :]   (pure VPU work over lanes)
    h = jnp.broadcast_to(b1, (h_dim, tb))
    for i in range(d):
        h = h + w1t[:, i:i + 1] * x[i:i + 1, :]
    h = jnp.maximum(h, 0.0)

    # ---- Linear(4*dim -> dim), unrolled over the K=20 contraction ----------
    z = jnp.broadcast_to(b2, (d, tb))
    for j in range(h_dim):
        z = z + w2t[:, j:j + 1] * h[j:j + 1, :]

    # ---- Sigmoid via EUP exp + approximate reciprocal (EUP), then gate -----
    gate = pl.reciprocal(1.0 + jnp.exp(-z), approx=True)
    o_ref[...] = (gate * x).astype(o_ref.dtype)


def ca_module_forward(all_coef, w1, b1, w2, b2, *, tile_b=512):
    """all_coef: (B, D).  w1: (D, H), b1: (H,), w2: (H, D), b2: (D,)."""
    B, D = all_coef.shape
    H = w1.shape[1]

    # Lane tile must be a multiple of 128.
    tile_b = max(128, (int(tile_b) // 128) * 128)
    num_tiles = -(-B // tile_b)
    b_pad = num_tiles * tile_b

    # Wrapper-side layout plumbing: batch -> lanes, zero-pad to tile boundary.
    x_t = jnp.pad(all_coef.T, ((0, 0), (0, b_pad - B)))          # (D, b_pad)
    w1t = w1.T.astype(jnp.float32)                               # (H, D)
    b1c = b1.reshape(H, 1).astype(jnp.float32)                   # (H, 1)
    w2t = w2.T.astype(jnp.float32)                               # (D, H)
    b2c = b2.reshape(D, 1).astype(jnp.float32)                   # (D, 1)

    out_t = pl.pallas_call(
        ca_kernel,
        out_shape=jax.ShapeDtypeStruct((D, b_pad), all_coef.dtype),
        grid=(num_tiles,),
        in_specs=[
            pl.BlockSpec((D, tile_b), lambda i: (0, i)),   # x tile (lane-dense)
            pl.BlockSpec((H, D), lambda i: (0, 0)),        # W1^T, VMEM-resident
            pl.BlockSpec((H, 1), lambda i: (0, 0)),        # b1
            pl.BlockSpec((D, H), lambda i: (0, 0)),        # W2^T, VMEM-resident
            pl.BlockSpec((D, 1), lambda i: (0, 0)),        # b2
        ],
        out_specs=pl.BlockSpec((D, tile_b), lambda i: (0, i)),
        compiler_params=pltpu.CompilerParams(
            dimension_semantics=("parallel",)),
    )(x_t, w1t, b1c, w2t, b2c)

    return out_t[:, :B].T                                        # back to (B, D)


def init_params(key, dim):
    hidden = dim * 4
    k1, k2, k3, k4 = jax.random.split(key, 4)
    # Deterministic synthetic init (uniform, PyTorch-Linear-like bounds).
    bound1 = 1.0 / jnp.sqrt(dim)
    bound2 = 1.0 / jnp.sqrt(hidden)
    w1 = jax.random.uniform(k1, (dim, hidden), jnp.float32, -bound1, bound1)
    b1 = jax.random.uniform(k2, (hidden,), jnp.float32, -bound1, bound1)
    w2 = jax.random.uniform(k3, (hidden, dim), jnp.float32, -bound2, bound2)
    b2 = jax.random.uniform(k4, (dim,), jnp.float32, -bound2, bound2)
    return w1, b1, w2, b2


def reference_forward(x, w1, b1, w2, b2):
    h = jnp.maximum(x @ w1 + b1, 0.0)
    g = jax.nn.sigmoid(h @ w2 + b2)
    return g * x


if __name__ == "__main__":
    key = jax.random.PRNGKey(0)
    dim = 5          # matches CAModule(dim=5)
    batch = 300      # deliberately not a multiple of 128: exercises pad + grid

    kx, kp = jax.random.split(key)
    all_coef = jax.random.normal(kx, (batch, dim), dtype=jnp.float32)
    w1, b1, w2, b2 = init_params(kp, dim)

    out = ca_module_forward(all_coef, w1, b1, w2, b2, tile_b=128)
    out = jax.block_until_ready(out)

    ref = reference_forward(all_coef, w1, b1, w2, b2)
    assert out.shape == all_coef.shape
    # approx reciprocal in the sigmoid => slightly looser tolerance than exact.
    max_err = float(jnp.max(jnp.abs(out - ref)))
    assert max_err < 5e-3, f"max abs err {max_err}"

    print("KERNEL_OK")
</pallas_src>

<mosaic_0001>
module attributes {stable_mosaic.version = 11 : i64} {
  func.func @ca_kernel(%arg0: i32, %arg1: memref<5x128xf32, #tpu.memory_space<vmem>>, %arg2: memref<20x5xf32, #tpu.memory_space<vmem>>, %arg3: memref<20x1xf32, #tpu.memory_space<vmem>>, %arg4: memref<5x20xf32, #tpu.memory_space<vmem>>, %arg5: memref<5x1xf32, #tpu.memory_space<vmem>>, %arg6: memref<5x128xf32, #tpu.memory_space<vmem>>) attributes {dimension_semantics = [#tpu.dimension_semantics<parallel>], iteration_bounds = array<i64: 3>, scalar_prefetch = 0 : i64, scratch_operands = 0 : i64, tpu.core_type = #tpu.core_type<tc>, window_params = [{transform_indices = @transform_0, window_bounds = array<i64: 5, 128>}, {pipeline_mode = #tpu.pipeline_mode<synchronous>, transform_indices = @transform_1, window_bounds = array<i64: 20, 5>}, {pipeline_mode = #tpu.pipeline_mode<synchronous>, transform_indices = @transform_2, window_bounds = array<i64: 20, 1>}, {pipeline_mode = #tpu.pipeline_mode<synchronous>, transform_indices = @transform_3, window_bounds = array<i64: 5, 20>}, {pipeline_mode = #tpu.pipeline_mode<synchronous>, transform_indices = @transform_4, window_bounds = array<i64: 5, 1>}, {transform_indices = @transform_5, window_bounds = array<i64: 5, 128>}]} {
    %c0 = arith.constant 0 : index
    %c0_0 = arith.constant 0 : index
    %0 = vector.load %arg1[%c0, %c0_0] : memref<5x128xf32, #tpu.memory_space<vmem>>, vector<5x128xf32>
    %c0_1 = arith.constant 0 : index
    %c0_2 = arith.constant 0 : index
    %1 = vector.load %arg2[%c0_1, %c0_2] : memref<20x5xf32, #tpu.memory_space<vmem>>, vector<20x5xf32>
    %c0_3 = arith.constant 0 : index
    %c0_4 = arith.constant 0 : index
    %2 = vector.load %arg3[%c0_3, %c0_4] : memref<20x1xf32, #tpu.memory_space<vmem>>, vector<20x1xf32>
    %c0_5 = arith.constant 0 : index
    %c0_6 = arith.constant 0 : index
    %3 = vector.load %arg4[%c0_5, %c0_6] : memref<5x20xf32, #tpu.memory_space<vmem>>, vector<5x20xf32>
    %c0_7 = arith.constant 0 : index
    %c0_8 = arith.constant 0 : index
    %4 = vector.load %arg5[%c0_7, %c0_8] : memref<5x1xf32, #tpu.memory_space<vmem>>, vector<5x1xf32>
    %5 = vector.shape_cast %2 : vector<20x1xf32> to vector<20x1xf32>
    %6 = vector.broadcast %5 : vector<20x1xf32> to vector<20x128xf32>
    %7 = vector.extract_strided_slice %1 {offsets = [0, 0], sizes = [20, 1], strides = [1, 1]} : vector<20x5xf32> to vector<20x1xf32>
    %8 = vector.extract_strided_slice %0 {offsets = [0, 0], sizes = [1, 128], strides = [1, 1]} : vector<5x128xf32> to vector<1x128xf32>
    %9 = vector.broadcast %7 : vector<20x1xf32> to vector<20x128xf32>
    %10 = vector.broadcast %8 : vector<1x128xf32> to vector<20x128xf32>
    %11 = arith.mulf %9, %10 : vector<20x128xf32>
    %12 = arith.addf %6, %11 : vector<20x128xf32>
    %13 = vector.extract_strided_slice %1 {offsets = [0, 1], sizes = [20, 1], strides = [1, 1]} : vector<20x5xf32> to vector<20x1xf32>
    %14 = vector.extract_strided_slice %0 {offsets = [1, 0], sizes = [1, 128], strides = [1, 1]} : vector<5x128xf32> to vector<1x128xf32>
    %15 = vector.broadcast %13 : vector<20x1xf32> to vector<20x128xf32>
    %16 = vector.broadcast %14 : vector<1x128xf32> to vector<20x128xf32>
    %17 = arith.mulf %15, %16 : vector<20x128xf32>
    %18 = arith.addf %12, %17 : vector<20x128xf32>
    %19 = vector.extract_strided_slice %1 {offsets = [0, 2], sizes = [20, 1], strides = [1, 1]} : vector<20x5xf32> to vector<20x1xf32>
    %20 = vector.extract_strided_slice %0 {offsets = [2, 0], sizes = [1, 128], strides = [1, 1]} : vector<5x128xf32> to vector<1x128xf32>
    %21 = vector.broadcast %19 : vector<20x1xf32> to vector<20x128xf32>
    %22 = vector.broadcast %20 : vector<1x128xf32> to vector<20x128xf32>
    %23 = arith.mulf %21, %22 : vector<20x128xf32>
    %24 = arith.addf %18, %23 : vector<20x128xf32>
    %25 = vector.extract_strided_slice %1 {offsets = [0, 3], sizes = [20, 1], strides = [1, 1]} : vector<20x5xf32> to vector<20x1xf32>
    %26 = vector.extract_strided_slice %0 {offsets = [3, 0], sizes = [1, 128], strides = [1, 1]} : vector<5x128xf32> to vector<1x128xf32>
    %27 = vector.broadcast %25 : vector<20x1xf32> to vector<20x128xf32>
    %28 = vector.broadcast %26 : vector<1x128xf32> to vector<20x128xf32>
    %29 = arith.mulf %27, %28 : vector<20x128xf32>
    %30 = arith.addf %24, %29 : vector<20x128xf32>
    %31 = vector.extract_strided_slice %1 {offsets = [0, 4], sizes = [20, 1], strides = [1, 1]} : vector<20x5xf32> to vector<20x1xf32>
    %32 = vector.extract_strided_slice %0 {offsets = [4, 0], sizes = [1, 128], strides = [1, 1]} : vector<5x128xf32> to vector<1x128xf32>
    %33 = vector.broadcast %31 : vector<20x1xf32> to vector<20x128xf32>
    %34 = vector.broadcast %32 : vector<1x128xf32> to vector<20x128xf32>
    %35 = arith.mulf %33, %34 : vector<20x128xf32>
    %36 = arith.addf %30, %35 : vector<20x128xf32>
    %cst = arith.constant 0.000000e+00 : f32
    %37 = vector.broadcast %cst : f32 to vector<20x128xf32>
    %38 = arith.maximumf %36, %37 : vector<20x128xf32>
    %39 = vector.shape_cast %4 : vector<5x1xf32> to vector<5x1xf32>
    %40 = vector.broadcast %39 : vector<5x1xf32> to vector<5x128xf32>
    %41 = vector.extract_strided_slice %3 {offsets = [0, 0], sizes = [5, 1], strides = [1, 1]} : vector<5x20xf32> to vector<5x1xf32>
    %42 = vector.extract_strided_slice %38 {offsets = [0, 0], sizes = [1, 128], strides = [1, 1]} : vector<20x128xf32> to vector<1x128xf32>
    %43 = vector.broadcast %41 : vector<5x1xf32> to vector<5x128xf32>
    %44 = vector.broadcast %42 : vector<1x128xf32> to vector<5x128xf32>
    %45 = arith.mulf %43, %44 : vector<5x128xf32>
    %46 = arith.addf %40, %45 : vector<5x128xf32>
    %47 = vector.extract_strided_slice %3 {offsets = [0, 1], sizes = [5, 1], strides = [1, 1]} : vector<5x20xf32> to vector<5x1xf32>
    %48 = vector.extract_strided_slice %38 {offsets = [1, 0], sizes = [1, 128], strides = [1, 1]} : vector<20x128xf32> to vector<1x128xf32>
    %49 = vector.broadcast %47 : vector<5x1xf32> to vector<5x128xf32>
    %50 = vector.broadcast %48 : vector<1x128xf32> to vector<5x128xf32>
    %51 = arith.mulf %49, %50 : vector<5x128xf32>
    %52 = arith.addf %46, %51 : vector<5x128xf32>
    %53 = vector.extract_strided_slice %3 {offsets = [0, 2], sizes = [5, 1], strides = [1, 1]} : vector<5x20xf32> to vector<5x1xf32>
    %54 = vector.extract_strided_slice %38 {offsets = [2, 0], sizes = [1, 128], strides = [1, 1]} : vector<20x128xf32> to vector<1x128xf32>
    %55 = vector.broadcast %53 : vector<5x1xf32> to vector<5x128xf32>
    %56 = vector.broadcast %54 : vector<1x128xf32> to vector<5x128xf32>
    %57 = arith.mulf %55, %56 : vector<5x128xf32>
    %58 = arith.addf %52, %57 : vector<5x128xf32>
    %59 = vector.extract_strided_slice %3 {offsets = [0, 3], sizes = [5, 1], strides = [1, 1]} : vector<5x20xf32> to vector<5x1xf32>
    %60 = vector.extract_strided_slice %38 {offsets = [3, 0], sizes = [1, 128], strides = [1, 1]} : vector<20x128xf32> to vector<1x128xf32>
    %61 = vector.broadcast %59 : vector<5x1xf32> to vector<5x128xf32>
    %62 = vector.broadcast %60 : vector<1x128xf32> to vector<5x128xf32>
    %63 = arith.mulf %61, %62 : vector<5x128xf32>
    %64 = arith.addf %58, %63 : vector<5x128xf32>
    %65 = vector.extract_strided_slice %3 {offsets = [0, 4], sizes = [5, 1], strides = [1, 1]} : vector<5x20xf32> to vector<5x1xf32>
    %66 = vector.extract_strided_slice %38 {offsets = [4, 0], sizes = [1, 128], strides = [1, 1]} : vector<20x128xf32> to vector<1x128xf32>
    %67 = vector.broadcast %65 : vector<5x1xf32> to vector<5x128xf32>
    %68 = vector.broadcast %66 : vector<1x128xf32> to vector<5x128xf32>
    %69 = arith.mulf %67, %68 : vector<5x128xf32>
    %70 = arith.addf %64, %69 : vector<5x128xf32>
    %71 = vector.extract_strided_slice %3 {offsets = [0, 5], sizes = [5, 1], strides = [1, 1]} : vector<5x20xf32> to vector<5x1xf32>
    %72 = vector.extract_strided_slice %38 {offsets = [5, 0], sizes = [1, 128], strides = [1, 1]} : vector<20x128xf32> to vector<1x128xf32>
    %73 = vector.broadcast %71 : vector<5x1xf32> to vector<5x128xf32>
    %74 = vector.broadcast %72 : vector<1x128xf32> to vector<5x128xf32>
    %75 = arith.mulf %73, %74 : vector<5x128xf32>
    %76 = arith.addf %70, %75 : vector<5x128xf32>
    %77 = vector.extract_strided_slice %3 {offsets = [0, 6], sizes = [5, 1], strides = [1, 1]} : vector<5x20xf32> to vector<5x1xf32>
    %78 = vector.extract_strided_slice %38 {offsets = [6, 0], sizes = [1, 128], strides = [1, 1]} : vector<20x128xf32> to vector<1x128xf32>
    %79 = vector.broadcast %77 : vector<5x1xf32> to vector<5x128xf32>
    %80 = vector.broadcast %78 : vector<1x128xf32> to vector<5x128xf32>
    %81 = arith.mulf %79, %80 : vector<5x128xf32>
    %82 = arith.addf %76, %81 : vector<5x128xf32>
    %83 = vector.extract_strided_slice %3 {offsets = [0, 7], sizes = [5, 1], strides = [1, 1]} : vector<5x20xf32> to vector<5x1xf32>
    %84 = vector.extract_strided_slice %38 {offsets = [7, 0], sizes = [1, 128], strides = [1, 1]} : vector<20x128xf32> to vector<1x128xf32>
    %85 = vector.broadcast %83 : vector<5x1xf32> to vector<5x128xf32>
    %86 = vector.broadcast %84 : vector<1x128xf32> to vector<5x128xf32>
    %87 = arith.mulf %85, %86 : vector<5x128xf32>
    %88 = arith.addf %82, %87 : vector<5x128xf32>
    %89 = vector.extract_strided_slice %3 {offsets = [0, 8], sizes = [5, 1], strides = [1, 1]} : vector<5x20xf32> to vector<5x1xf32>
    %90 = vector.extract_strided_slice %38 {offsets = [8, 0], sizes = [1, 128], strides = [1, 1]} : vector<20x128xf32> to vector<1x128xf32>
    %91 = vector.broadcast %89 : vector<5x1xf32> to vector<5x128xf32>
    %92 = vector.broadcast %90 : vector<1x128xf32> to vector<5x128xf32>
    %93 = arith.mulf %91, %92 : vector<5x128xf32>
    %94 = arith.addf %88, %93 : vector<5x128xf32>
    %95 = vector.extract_strided_slice %3 {offsets = [0, 9], sizes = [5, 1], strides = [1, 1]} : vector<5x20xf32> to vector<5x1xf32>
    %96 = vector.extract_strided_slice %38 {offsets = [9, 0], sizes = [1, 128], strides = [1, 1]} : vector<20x128xf32> to vector<1x128xf32>
    %97 = vector.broadcast %95 : vector<5x1xf32> to vector<5x128xf32>
    %98 = vector.broadcast %96 : vector<1x128xf32> to vector<5x128xf32>
    %99 = arith.mulf %97, %98 : vector<5x128xf32>
    %100 = arith.addf %94, %99 : vector<5x128xf32>
    %101 = vector.extract_strided_slice %3 {offsets = [0, 10], sizes = [5, 1], strides = [1, 1]} : vector<5x20xf32> to vector<5x1xf32>
    %102 = vector.extract_strided_slice %38 {offsets = [10, 0], sizes = [1, 128], strides = [1, 1]} : vector<20x128xf32> to vector<1x128xf32>
    %103 = vector.broadcast %101 : vector<5x1xf32> to vector<5x128xf32>
    %104 = vector.broadcast %102 : vector<1x128xf32> to vector<5x128xf32>
    %105 = arith.mulf %103, %104 : vector<5x128xf32>
    %106 = arith.addf %100, %105 : vector<5x128xf32>
    %107 = vector.extract_strided_slice %3 {offsets = [0, 11], sizes = [5, 1], strides = [1, 1]} : vector<5x20xf32> to vector<5x1xf32>
    %108 = vector.extract_strided_slice %38 {offsets = [11, 0], sizes = [1, 128], strides = [1, 1]} : vector<20x128xf32> to vector<1x128xf32>
    %109 = vector.broadcast %107 : vector<5x1xf32> to vector<5x128xf32>
    %110 = vector.broadcast %108 : vector<1x128xf32> to vector<5x128xf32>
    %111 = arith.mulf %109, %110 : vector<5x128xf32>
    %112 = arith.addf %106, %111 : vector<5x128xf32>
    %113 = vector.extract_strided_slice %3 {offsets = [0, 12], sizes = [5, 1], strides = [1, 1]} : vector<5x20xf32> to vector<5x1xf32>
    %114 = vector.extract_strided_slice %38 {offsets = [12, 0], sizes = [1, 128], strides = [1, 1]} : vector<20x128xf32> to vector<1x128xf32>
    %115 = vector.broadcast %113 : vector<5x1xf32> to vector<5x128xf32>
    %116 = vector.broadcast %114 : vector<1x128xf32> to vector<5x128xf32>
    %117 = arith.mulf %115, %116 : vector<5x128xf32>
    %118 = arith.addf %112, %117 : vector<5x128xf32>
    %119 = vector.extract_strided_slice %3 {offsets = [0, 13], sizes = [5, 1], strides = [1, 1]} : vector<5x20xf32> to vector<5x1xf32>
    %120 = vector.extract_strided_slice %38 {offsets = [13, 0], sizes = [1, 128], strides = [1, 1]} : vector<20x128xf32> to vector<1x128xf32>
    %121 = vector.broadcast %119 : vector<5x1xf32> to vector<5x128xf32>
    %122 = vector.broadcast %120 : vector<1x128xf32> to vector<5x128xf32>
    %123 = arith.mulf %121, %122 : vector<5x128xf32>
    %124 = arith.addf %118, %123 : vector<5x128xf32>
    %125 = vector.extract_strided_slice %3 {offsets = [0, 14], sizes = [5, 1], strides = [1, 1]} : vector<5x20xf32> to vector<5x1xf32>
    %126 = vector.extract_strided_slice %38 {offsets = [14, 0], sizes = [1, 128], strides = [1, 1]} : vector<20x128xf32> to vector<1x128xf32>
    %127 = vector.broadcast %125 : vector<5x1xf32> to vector<5x128xf32>
    %128 = vector.broadcast %126 : vector<1x128xf32> to vector<5x128xf32>
    %129 = arith.mulf %127, %128 : vector<5x128xf32>
    %130 = arith.addf %124, %129 : vector<5x128xf32>
    %131 = vector.extract_strided_slice %3 {offsets = [0, 15], sizes = [5, 1], strides = [1, 1]} : vector<5x20xf32> to vector<5x1xf32>
    %132 = vector.extract_strided_slice %38 {offsets = [15, 0], sizes = [1, 128], strides = [1, 1]} : vector<20x128xf32> to vector<1x128xf32>
    %133 = vector.broadcast %131 : vector<5x1xf32> to vector<5x128xf32>
    %134 = vector.broadcast %132 : vector<1x128xf32> to vector<5x128xf32>
    %135 = arith.mulf %133, %134 : vector<5x128xf32>
    %136 = arith.addf %130, %135 : vector<5x128xf32>
    %137 = vector.extract_strided_slice %3 {offsets = [0, 16], sizes = [5, 1], strides = [1, 1]} : vector<5x20xf32> to vector<5x1xf32>
    %138 = vector.extract_strided_slice %38 {offsets = [16, 0], sizes = [1, 128], strides = [1, 1]} : vector<20x128xf32> to vector<1x128xf32>
    %139 = vector.broadcast %137 : vector<5x1xf32> to vector<5x128xf32>
    %140 = vector.broadcast %138 : vector<1x128xf32> to vector<5x128xf32>
    %141 = arith.mulf %139, %140 : vector<5x128xf32>
    %142 = arith.addf %136, %141 : vector<5x128xf32>
    %143 = vector.extract_strided_slice %3 {offsets = [0, 17], sizes = [5, 1], strides = [1, 1]} : vector<5x20xf32> to vector<5x1xf32>
    %144 = vector.extract_strided_slice %38 {offsets = [17, 0], sizes = [1, 128], strides = [1, 1]} : vector<20x128xf32> to vector<1x128xf32>
    %145 = vector.broadcast %143 : vector<5x1xf32> to vector<5x128xf32>
    %146 = vector.broadcast %144 : vector<1x128xf32> to vector<5x128xf32>
    %147 = arith.mulf %145, %146 : vector<5x128xf32>
    %148 = arith.addf %142, %147 : vector<5x128xf32>
    %149 = vector.extract_strided_slice %3 {offsets = [0, 18], sizes = [5, 1], strides = [1, 1]} : vector<5x20xf32> to vector<5x1xf32>
    %150 = vector.extract_strided_slice %38 {offsets = [18, 0], sizes = [1, 128], strides = [1, 1]} : vector<20x128xf32> to vector<1x128xf32>
    %151 = vector.broadcast %149 : vector<5x1xf32> to vector<5x128xf32>
    %152 = vector.broadcast %150 : vector<1x128xf32> to vector<5x128xf32>
    %153 = arith.mulf %151, %152 : vector<5x128xf32>
    %154 = arith.addf %148, %153 : vector<5x128xf32>
    %155 = vector.extract_strided_slice %3 {offsets = [0, 19], sizes = [5, 1], strides = [1, 1]} : vector<5x20xf32> to vector<5x1xf32>
    %156 = vector.extract_strided_slice %38 {offsets = [19, 0], sizes = [1, 128], strides = [1, 1]} : vector<20x128xf32> to vector<1x128xf32>
    %157 = vector.broadcast %155 : vector<5x1xf32> to vector<5x128xf32>
    %158 = vector.broadcast %156 : vector<1x128xf32> to vector<5x128xf32>
    %159 = arith.mulf %157, %158 : vector<5x128xf32>
    %160 = arith.addf %154, %159 : vector<5x128xf32>
    %cst_9 = arith.constant 0.000000e+00 : f32
    %161 = vector.broadcast %cst_9 : f32 to vector<5x128xf32>
    %162 = arith.subf %161, %160 : vector<5x128xf32>
    %163 = math.exp %162 : vector<5x128xf32>
    %cst_10 = arith.constant 1.000000e+00 : f32
    %164 = vector.broadcast %cst_10 : f32 to vector<5x128xf32>
    %165 = arith.addf %164, %163 : vector<5x128xf32>
    %166 = tpu.reciprocal %165 {approx = true} : vector<5x128xf32> -> vector<5x128xf32>
    %167 = arith.mulf %166, %0 : vector<5x128xf32>
    %c0_11 = arith.constant 0 : index
    %c0_12 = arith.constant 0 : index
    %168 = vector.load %arg6[%c0_11, %c0_12] : memref<5x128xf32, #tpu.memory_space<vmem>>, vector<5x128xf32>
    tpu.vector_store %arg6[%c0_11, %c0_12], %167 {strides = array<i32>} : memref<5x128xf32, #tpu.memory_space<vmem>>, vector<5x128xf32>,
    return
  }
  func.func @transform_0(%arg0: i32) -> (i32, i32) {
    %c0_i32 = arith.constant 0 : i32
    %c0_i32_0 = arith.constant 0 : i32
    return %c0_i32, %arg0 : i32, i32
  }
  func.func @transform_1(%arg0: i32) -> (i32, i32) {
    %c0_i32 = arith.constant 0 : i32
    %c0_i32_0 = arith.constant 0 : i32
    %c0_i32_1 = arith.constant 0 : i32
    return %c0_i32, %c0_i32_0 : i32, i32
  }
  func.func @transform_2(%arg0: i32) -> (i32, i32) {
    %c0_i32 = arith.constant 0 : i32
    %c0_i32_0 = arith.constant 0 : i32
    %c0_i32_1 = arith.constant 0 : i32
    return %c0_i32, %c0_i32_0 : i32, i32
  }
  func.func @transform_3(%arg0: i32) -> (i32, i32) {
    %c0_i32 = arith.constant 0 : i32
    %c0_i32_0 = arith.constant 0 : i32
    %c0_i32_1 = arith.constant 0 : i32
    return %c0_i32, %c0_i32_0 : i32, i32
  }
  func.func @transform_4(%arg0: i32) -> (i32, i32) {
    %c0_i32 = arith.constant 0 : i32
    %c0_i32_0 = arith.constant 0 : i32
    %c0_i32_1 = arith.constant 0 : i32
    return %c0_i32, %c0_i32_0 : i32, i32
  }
  func.func @transform_5(%arg0: i32) -> (i32, i32) {
    %c0_i32 = arith.constant 0 : i32
    %c0_i32_0 = arith.constant 0 : i32
    return %c0_i32, %arg0 : i32, i32
  }
}

</mosaic_0001>

<bundles_post_ra>
// kernel: tpu_custom_call.1
= control target key start
LH: loop header
LB: loop body
LE: loop exit
PB: predicated region body
PF: predicated region fallthrough
CT: control target
= control target key end

     0   :  { %10 = vsyncpa [#allocation3], 0  ;;  %s1097_s0 = inlined_call_operand.vmem [shape: f32[5,384], index: 0, kind: input, shape index: {}]   ;;  %s1098_s1 = inlined_call_operand.vmem [shape: f32[20,5], index: 1, kind: input, shape index: {}]   ;;  %s1099_s2 = inlined_call_operand.vmem [shape: f32[20,1], index: 2, kind: input, shape index: {}]   ;;  %s1100_s3 = inlined_call_operand.vmem [shape: f32[5,20], index: 3, kind: input, shape index: {}]   ;;  %s1101_s4 = inlined_call_operand.vmem [shape: f32[5,1], index: 4, kind: input, shape index: {}]   ;;  %s1102_s5 = inlined_call_operand.hbm [shape: f32[5,384], index: 5, kind: output, shape index: {}]  }
   0x1   :  { %12 = vsyncpa [#allocation3 + $0x1], 0  ;;  %s866_s18 = smov 0   ;;  %s868_s19 = smov 0  }
   0x2   :  { %s870_s20 = smov 0   ;;  %s872_s21 = smov 0  }
   0x3 LB: > { %s887_s22 = sadd.s32 4294967295, %s813_s21   ;;  %s646_s23 = sadd.s32 4294967294, %s813_s21   ;;  %s813_s21 = sphi %s872_s21, %s1108_s21   ;;  %s809_s20 = sphi %s870_s20, %s1107_s20   ;;  %s805_s19 = sphi %s868_s19, %s1106_s19   ;;  %s801_s18 = sphi %s866_s18, %s1105_s18  }
   0x4   : > { %s891_s24 = sadd.s32 1, %s813_s21   ;;  %s135_s25 = sadd.s32 1, %s809_s20 }
   0x5   : > { %s132_s26 = ssub.s32 %s813_s21, %s891_s24  ;;  %p145_p0 = scmp.ne.s32.totalorder %s809_s20, %s805_s19 }
   0x6   : > { %p133_p1 = scmp.eq.s32.totalorder %s132_s26, 0  ;;  %p146_p2 = scmp.eq.s32.totalorder %s887_s22, 2 }
   0x7   : > { %p151_p3 = scmp.ne.s32.totalorder %s805_s19, %s801_s18  ;;  %p152_p4 = scmp.eq.s32.totalorder %s646_s23, 2 }
   0x8   : > { %s902_s27 = scalar_select %p133_p1, %s809_s20, %s135_s25  }
   0x9   : > { %p904_p5 = por %p146_p2, %p145_p0  ;;  %p908_p6 = por %p152_p4, %p151_p3 }
   0xa   : > { %p649_p7 = scmp.ge.s32.totalorder %s813_s21, 1  ;;  %p189_p8 = scmp.lt.s32.totalorder %s813_s21, 4 }
   0xc   : > { %p190_p9 = pnand %p649_p7, %p189_p8 }
   0xd   : > { %v222_v0 = vld [vmem:[%s1098_s1 + $0x8] sm:$0xff] (!%p190_p9)  ;;  %v221_v1 = vld [vmem:[%s1098_s1] sm:$0xff] (!%p190_p9)  ;;  %v815_v2 = vmov (!%p190_p9), 2   ;;  %v816_v3 = vmov (!%p190_p9), 1   ;;  %v817_v4 = vmov (!%p190_p9), 3   ;;  %v818_v6 = vmov (!%p190_p9), 4  }
   0xe   : > { %193 = sbr.rel (%p190_p9) target bundleno = 308 (0x134), region = 40  ;;  %720 = vset.pattern.permute.xlu0 (!%p190_p9), %v815_v2  ;;  %715 = vset.pattern.permute.xlu1 (!%p190_p9), %v816_v3  ;;  %v926_v5 = vld [vmem:[%s1100_s3] sm:$0x1f] (!%p190_p9)  ;;  %v819_v7 = vmov (!%p190_p9), 5   ;;  %v820_v8 = vmov (!%p190_p9), 0   ;;  %v225_v9 = vld [vmem:[%s1099_s2 + $0x8] sm:$0xff] (!%p190_p9)  ;;  %v259_v34 = vlaneseq (!%p190_p9) }
   0xf   : > { %296 = vperm.xlu0 (!%p190_p9), %720, %v222_v0   ;;  %270 = vperm.xlu1 (!%p190_p9), %715, %v221_v1   ;;  %v224_v10 = vld [vmem:[%s1099_s2] sm:$0xff] (!%p190_p9)  ;;  %v223_v12 = vld [vmem:[%s1098_s1 + $0x10] sm:$0xf] (!%p190_p9)  ;;  %v821_v13 = vmov (!%p190_p9), 10   ;;  %v822_v14 = vmov (!%p190_p9), 6   ;;  %v823_v15 = vmov (!%p190_p9), 14  }
  0x10   : > { %v228_v11 = vld [vmem:[%s1101_s4] sm:$0x1f] (!%p190_p9)  ;;  %v824_v16 = vmov (!%p190_p9), 7   ;;  %v825_v17 = vmov (!%p190_p9), 17   ;;  %v826_v18 = vmov (!%p190_p9), 8   ;;  %v827_v20 = vmov (!%p190_p9), 19  }
  0x11   : > { %v226_v19 = vld [vmem:[%s1099_s2 + $0x10] sm:$0xf] (!%p190_p9)  ;;  %v828_v21 = vmov (!%p190_p9), 9   ;;  %v829_v22 = vmov (!%p190_p9), 11   ;;  %v830_v23 = vmov (!%p190_p9), 12   ;;  %v831_v24 = vmov (!%p190_p9), 13  }
  0x12   : > { %v832_v25 = vmov (!%p190_p9), 15   ;;  %v833_v26 = vmov (!%p190_p9), 16   ;;  %v834_v27 = vmov (!%p190_p9), 18   ;;  %p216_p10 = scmp.lt.s32.totalorder (!%p190_p9), %s887_s22, 2  ;;  %v973_v37 = vshrl.u32 (!%p190_p9), %v259_v34, 7  ;;  %s213_s10 = sand.u32 (!%p190_p9), 1, %s805_s19  }
  0x13   : > { %721 = vset.pattern.permute.xlu0 (!%p190_p9), %v817_v4  ;;  %716 = vset.pattern.permute.xlu1 (!%p190_p9), %v815_v2  ;;  %s650_s11 = sshll.u32 (!%p190_p9), %s213_s10, 3  ;;  %s653_s12 = sshll.u32 (!%p190_p9), %s887_s22, 7 }
  0x14   : > { %314 = vperm.xlu0 (!%p190_p9), %721, %v221_v1   ;;  %292 = vperm.xlu1 (!%p190_p9), %716, %v221_v1   ;;  %v979_v39 = vsub.s32 (!%p190_p9), 0, %v973_v37  ;;  %v984_v42 = vsub.s32 (!%p190_p9), 1, %v973_v37  ;;  %v996_v48 = vsub.s32 (!%p190_p9), 2, %v973_v37  ;;  %v999_v50 = vsub.s32 (!%p190_p9), 3, %v973_v37  ;;  %s215_s13 = scalar_lea.vmem (!%p190_p9), [#allocation2], %s650_s11  ;;  %s1055_s17 = scalar_lea.hbm (!%p190_p9), %s1102_s5, %s653_s12 }
  0x15   : > { %s217_s30 = scalar_select %p216_p10, %s887_s22, 2  ;;  %v1012_v58 = vsub.s32 4, %v973_v37 }
  0x16   : > { %s587_s14 = sshll.u32 %s215_s13, 4  ;;  %s574_s23 = scalar_lea.sflag [#allocation3], %s213_s10  ;;  %s1057_s14 = int_to_ptr.vmem [resolvable:$true] %s587_s14 }
  0x17   : > { %s651_s6 = sshll.u32 %s217_s30, 3  ;;  %s751_s25 = scalar_lea.vmem %s1057_s14, 128 }
  0x18   : > { %397 = vperm.xlu0 %721, %v926_v5   ;;  %717 = vset.pattern.permute.xlu1 %v818_v6  ;;  %s219_s9 = scalar_lea.vmem %s1097_s0, %s651_s6  ;;  %p752_p11 = scmp.ne.s32.totalorder %s1057_s14, %s751_s25 }
  0x19   : > { %336 = vperm.xlu1 %717, %v221_v1   ;;  %v981_v41 = vld [vmem:[%s219_s9] sm:$0x1f]  ;;  %s835_s22 = smov [#allocation2]  }
  0x1a   : > { %v988_v43 = vrot.slane %v981_v41, %v979_v39  ;;  %v993_v47 = vrot.slane %v981_v41, %v984_v42  ;;  %v1004_v53 = vrot.slane %v981_v41, %v996_v48  ;;  %v1008_v55 = vrot.slane %v981_v41, %v999_v50  ;;  %p753_p12 = pnand %p752_p11, %p904_p5  ;;  %s755_s26 = sshll.u32 %s835_s22, 4  ;;  %s756_s26 = int_to_ptr.vmem [resolvable:$false] %s755_s26 }
  0x1b   : > { %v1017_v62 = vrot.slane %v981_v41, %v1012_v58  ;;  %s757_s30 = scalar_lea.vmem %s756_s26, 256  ;;  %p758_p0 = scmp.lt.s32.totalorder %s1057_s14, %s756_s26 }
  0x1c   : > { %725 = vset.pattern.permute.xlu0 %v819_v7  ;;  %p754_p13 = pneg %p753_p12  ;;  %p759_p1 = scmp.lt.s32.totalorder %s757_s30, %s751_s25 }
  0x1d   : > { %417 = vperm.xlu0 %725, %v926_v5   ;;  %718 = vset.pattern.permute.xlu1 %v820_v8 }
  0x1e   : > { %251 = vperm.xlu1 %718, %v222_v0   ;;  %p760_p2 = por %p759_p1, %p758_p0 }
  0x20   : > { %p761_p3 = pnand %p760_p2, %p754_p13 }
  0x21   : > { %726 = vset.pattern.permute.xlu0 %v820_v8 }
  0x22   : > { %246 = vperm.xlu0 %726, %v221_v1   ;;  %236 = vperm.xlu1 %718, %v225_v9  }
  0x26   : > { %231 = vperm.xlu0 %726, %v224_v10   ;;  %719 = vset.pattern.permute.xlu1 %v816_v3 }
  0x27   : > { %274 = vperm.xlu1 %719, %v222_v0  }
  0x2a   : > { %367 = vperm.xlu0 %726, %v926_v5  }
  0x2b   : > { %377 = vperm.xlu1 %719, %v926_v5  }
  0x2e   : > { %362 = vperm.xlu0 %726, %v228_v11  }
  0x2f   : > { %722 = vset.pattern.permute.xlu1 %v815_v2 }
  0x30   : > { %387 = vperm.xlu1 %722, %v926_v5  }
  0x32   : > { %256 = vperm.xlu0 %726, %v223_v12  }
  0x34   : > { %723 = vset.pattern.permute.xlu1 %v817_v4 }
  0x35   : > { %318 = vperm.xlu1 %723, %v222_v0  }
  0x36   : > { %731 = vset.pattern.permute.xlu0 %v816_v3 }
  0x37   : > { %278 = vperm.xlu0 %731, %v223_v12  }
  0x39   : > { %724 = vset.pattern.permute.xlu1 %v818_v6 }
  0x3a   : > { %340 = vperm.xlu1 %724, %v222_v0  }
  0x3b   : > { %734 = vset.pattern.permute.xlu0 %v821_v13 }
  0x3c   : > { %467 = vperm.xlu0 %734, %v926_v5  }
  0x3e   : > { %407 = vperm.xlu1 %724, %v926_v5  }
  0x40   : > { %737 = vset.pattern.permute.xlu0 %v818_v6 }
  0x41   : > { %344 = vperm.xlu0 %737, %v223_v12  }
  0x42   : > { %727 = vset.pattern.permute.xlu1 %v822_v14 }
  0x43   : > { %427 = vperm.xlu1 %727, %v926_v5  }
  0x45   : > { %740 = vset.pattern.permute.xlu0 %v823_v15 }
  0x46   : > { %507 = vperm.xlu0 %740, %v926_v5  }
  0x47   : > { %728 = vset.pattern.permute.xlu1 %v824_v16 }
  0x48   : > { %437 = vperm.xlu1 %728, %v926_v5  }
  0x4a   : > { %743 = vset.pattern.permute.xlu0 %v825_v17 }
  0x4b   : > { %537 = vperm.xlu0 %743, %v926_v5  }
  0x4c   : > { %729 = vset.pattern.permute.xlu1 %v826_v18 }
  0x4d   : > { %447 = vperm.xlu1 %729, %v926_v5  }
  0x4f   : > { %746 = vset.pattern.permute.xlu0 %v827_v20 }
  0x51   : > { %730 = vset.pattern.permute.xlu1 %v820_v8 }
  0x52   : > { %241 = vperm.xlu1 %730, %v226_v19  }
  0x56   : > { %732 = vset.pattern.permute.xlu1 %v828_v21 }
  0x57   : > { %457 = vperm.xlu1 %732, %v926_v5  }
  0x5b   : > { %733 = vset.pattern.permute.xlu1 %v815_v2 }
  0x5c   : > { %300 = vperm.xlu1 %733, %v223_v12  }
  0x60   : > { %735 = vset.pattern.permute.xlu1 %v817_v4 }
  0x61   : > { %322 = vperm.xlu1 %735, %v223_v12  }
  0x65   : > { %736 = vset.pattern.permute.xlu1 %v829_v22 }
  0x66   : > { %477 = vperm.xlu1 %736, %v926_v5  }
  0x6a   : > { %738 = vset.pattern.permute.xlu1 %v830_v23 }
  0x6b   : > { %487 = vperm.xlu1 %738, %v926_v5  }
  0x6f   : > { %739 = vset.pattern.permute.xlu1 %v831_v24 }
  0x70   : > { %497 = vperm.xlu1 %739, %v926_v5  }
  0x74   : > { %741 = vset.pattern.permute.xlu1 %v832_v25 }
  0x75   : > { %517 = vperm.xlu1 %741, %v926_v5  }
  0x79   : > { %742 = vset.pattern.permute.xlu1 %v833_v26  ;;  %v422_v26 = vsub.s32 5, %v973_v37 }
  0x7a   : > { %527 = vperm.xlu1 %742, %v926_v5  }
  0x7e   : > { %744 = vset.pattern.permute.xlu1 %v834_v27 }
  0x7f   : > { %547 = vperm.xlu1 %744, %v926_v5  }
  0x83   : > { %745 = vset.pattern.permute.xlu1 %v827_v20 }
  0x84   : > { %557 = vperm.xlu1 %745, %v926_v5  }
  0x8e   : > { %v271_v28 = vpop.permute.xlu1 %270  ;;  %v297_v29 = vpop.permute.xlu0 %296 }
  0x8f   : > { %v285_v52 = vmul.f32 %v993_v47, %v271_v28  ;;  %v308_v19 = vmul.f32 %v1004_v53, %v297_v29 }
  0x93   : > { %v293_v30 = vpop.permute.xlu1 %292  ;;  %v315_v31 = vpop.permute.xlu0 %314 }
  0x94   : > { %v307_v57 = vmul.f32 %v1004_v53, %v293_v30  ;;  %v329_v59 = vmul.f32 %v1008_v55, %v315_v31 }
  0x97   : > { %v968_v32 = vpop.permute.xlu0 %397 }
  0x98   : > { %v337_v33 = vpop.permute.xlu1 %336 }
  0x99   : > { %v351_v1 = vmul.f32 %v1017_v62, %v337_v33 }
  0x9c   : > { %v971_v35 = vpop.permute.xlu0 %417 }
  0x9d   : > { %v252_v36 = vpop.permute.xlu1 %251 }
  0x9e   : > { %v264_v12 = vmul.f32 %v988_v43, %v252_v36 }
  0xa1   : > { %v237_v38 = vpop.permute.xlu1 %236  ;;  %v247_v40 = vpop.permute.xlu0 %246 }
  0xa2   : > { %v263_v45 = vmul.f32 %v988_v43, %v247_v40  ;;  %v267_v16 = vadd.f32 %v264_v12, %v237_v38 }
  0xa5   : > { %v232_v46 = vpop.permute.xlu0 %231 }
  0xa6   : > { %v275_v44 = vpop.permute.xlu1 %274  ;;  %v266_v51 = vadd.f32 %v263_v45, %v232_v46 }
  0xa7   : > { %v286_v13 = vmul.f32 %v993_v47, %v275_v44  ;;  %v432_v44 = vsub.s32 6, %v973_v37 }
  0xa8   : > { %v288_v56 = vadd.f32 %v285_v52, %v266_v51  ;;  %v442_v51 = vsub.s32 7, %v973_v37 }
  0xa9   : > { %v368_v7 = vpop.permute.xlu0 %367  ;;  %v289_v20 = vadd.f32 %v286_v13, %v267_v16 }
  0xaa   : > { %v378_v49 = vpop.permute.xlu1 %377  ;;  %v310_v60 = vadd.f32 %v307_v57, %v288_v56 }
  0xab   : > { %v311_v28 = vadd.f32 %v308_v19, %v289_v20 }
  0xac   : > { %v332_v63 = vadd.f32 %v329_v59, %v310_v60 }
  0xad   : > { %v363_v11 = vpop.permute.xlu0 %362 }
  0xae   : > { %v354_v2 = vadd.f32 %v351_v1, %v332_v63 }
  0xaf   : > { %v388_v54 = vpop.permute.xlu1 %387 }
  0xb0   : > { %v357_v4 = vmax.f32 %v354_v2, 0.0 }
  0xb1   : > { %v257_v46 = vpop.permute.xlu0 %256 }
  0xb2   : > { %v373_v6 = vrot.slane %v357_v4, %v979_v39  ;;  %v383_v10 = vrot.slane %v357_v4, %v984_v42  ;;  %v393_v18 = vrot.slane %v357_v4, %v996_v48  ;;  %v403_v25 = vrot.slane %v357_v4, %v999_v50 }
  0xb3   : > { %v413_v31 = vrot.slane %v357_v4, %v1012_v58  ;;  %v423_v45 = vrot.slane %v357_v4, %v422_v26  ;;  %v433_v57 = vrot.slane %v357_v4, %v432_v44  ;;  %v265_v2 = vmul.f32 %v988_v43, %v257_v46 }
  0xb4   : > { %v319_v61 = vpop.permute.xlu1 %318  ;;  %v374_v9 = vmul.f32 %v373_v6, %v368_v7  ;;  %v384_v17 = vmul.f32 %v383_v10, %v378_v49  ;;  %v394_v23 = vmul.f32 %v393_v18, %v388_v54  ;;  %v404_v34 = vmul.f32 %v403_v25, %v968_v32 }
  0xb5   : > { %v330_v24 = vmul.f32 %v1008_v55, %v319_v61  ;;  %v424_v56 = vmul.f32 %v423_v45, %v971_v35  ;;  %v443_v61 = vrot.slane %v357_v4, %v442_v51 }
  0xb6   : > { %v375_v14 = vadd.f32 %v374_v9, %v363_v11  ;;  %v279_v32 = vpop.permute.xlu0 %278 }
  0xb7   : > { %v333_v33 = vadd.f32 %v330_v24, %v311_v28  ;;  %v287_v37 = vmul.f32 %v993_v47, %v279_v32 }
  0xb8   : > { %v385_v21 = vadd.f32 %v384_v17, %v375_v14 }
  0xb9   : > { %v341_v0 = vpop.permute.xlu1 %340 }
  0xba   : > { %v395_v27 = vadd.f32 %v394_v23, %v385_v21  ;;  %v352_v30 = vmul.f32 %v1017_v62, %v341_v0 }
  0xbb   : > { %v468_v11 = vpop.permute.xlu0 %467 }
  0xbc   : > { %v355_v38 = vadd.f32 %v352_v30, %v333_v33  ;;  %v405_v40 = vadd.f32 %v404_v34, %v395_v27 }
  0xbd   : > { %v408_v3 = vpop.permute.xlu1 %407 }
  0xbe   : > { %v414_v29 = vmul.f32 %v413_v31, %v408_v3  ;;  %v358_v54 = vmax.f32 %v355_v38, 0.0 }
  0xc0   : > { %v415_v49 = vadd.f32 %v414_v29, %v405_v40  ;;  %v453_v0 = vrot.slane %v358_v54, %v979_v39  ;;  %v463_v7 = vrot.slane %v358_v54, %v984_v42  ;;  %v473_v4 = vrot.slane %v358_v54, %v996_v48  ;;  %v345_v20 = vpop.permute.xlu0 %344 }
  0xc1   : > { %v493_v19 = vrot.slane %v358_v54, %v1012_v58  ;;  %v353_v21 = vmul.f32 %v1017_v62, %v345_v20  ;;  %v513_v33 = vrot.slane %v358_v54, %v432_v44  ;;  %v523_v40 = vrot.slane %v358_v54, %v442_v51 }
  0xc2   : > { %v428_v5 = vpop.permute.xlu1 %427  ;;  %v425_v59 = vadd.f32 %v424_v56, %v415_v49  ;;  %v474_v16 = vmul.f32 %v473_v4, %v468_v11 }
  0xc3   : > { %v434_v60 = vmul.f32 %v433_v57, %v428_v5 }
  0xc5   : > { %v435_v3 = vadd.f32 %v434_v60, %v425_v59  ;;  %v508_v31 = vpop.permute.xlu0 %507 }
  0xc6   : > { %v514_v29 = vmul.f32 %v513_v33, %v508_v31 }
  0xc7   : > { %v438_v8 = vpop.permute.xlu1 %437 }
  0xc8   : > { %v444_v63 = vmul.f32 %v443_v61, %v438_v8 }
  0xca   : > { %v445_v9 = vadd.f32 %v444_v63, %v435_v3  ;;  %v538_v56 = vpop.permute.xlu0 %537 }
  0xcc   : > { %v448_v15 = vpop.permute.xlu1 %447 }
  0xcd   : > { %v454_v6 = vmul.f32 %v453_v0, %v448_v15  ;;  %v483_v15 = vrot.slane %v358_v54, %v999_v50 }
  0xcf   : > { %v455_v5 = vadd.f32 %v454_v6, %v445_v9 }
  0xd1   : > { %v242_v22 = vpop.permute.xlu1 %241 }
  0xd2   : > { %v268_v10 = vadd.f32 %v265_v2, %v242_v22 }
  0xd4   : > { %v290_v13 = vadd.f32 %v287_v37, %v268_v10 }
  0xd6   : > { %v458_v36 = vpop.permute.xlu1 %457 }
  0xd7   : > { %v464_v35 = vmul.f32 %v463_v7, %v458_v36 }
  0xd9   : > { %v465_v14 = vadd.f32 %v464_v35, %v455_v5 }
  0xdb   : > { %v301_v52 = vpop.permute.xlu1 %300  ;;  %v475_v23 = vadd.f32 %v474_v16, %v465_v14 }
  0xdc   : > { %v309_v8 = vmul.f32 %v1004_v53, %v301_v52  ;;  %v503_v53 = vrot.slane %v358_v54, %v422_v26 }
  0xde   : > { %v312_v17 = vadd.f32 %v309_v8, %v290_v13 }
  0xe0   : > { %v323_v1 = vpop.permute.xlu1 %322 }
  0xe1   : > { %v331_v43 = vmul.f32 %v1008_v55, %v323_v1 }
  0xe3   : > { %v334_v22 = vadd.f32 %v331_v43, %v312_v17 }
  0xe5   : > { %v478_v12 = vpop.permute.xlu1 %477  ;;  %v356_v28 = vadd.f32 %v353_v21, %v334_v22 }
  0xe6   : > { %v484_v18 = vmul.f32 %v483_v15, %v478_v12 }
  0xe7   : > { %v359_v36 = vmax.f32 %v356_v28, 0.0 }
  0xe8   : > { %v485_v25 = vadd.f32 %v484_v18, %v475_v23 }
  0xe9   : > { %v533_v62 = vrot.slane %v359_v36, %v979_v39  ;;  %v543_v49 = vrot.slane %v359_v36, %v984_v42  ;;  %v553_v44 = vrot.slane %v359_v36, %v996_v48  ;;  %v563_v51 = vrot.slane %v359_v36, %v999_v50 }
  0xea   : > { %v488_v47 = vpop.permute.xlu1 %487 }
  0xeb   : > { %v494_v24 = vmul.f32 %v493_v19, %v488_v47  ;;  %v544_v59 = vmul.f32 %v543_v49, %v538_v56 }
  0xed   : > { %v495_v30 = vadd.f32 %v494_v24, %v485_v25 }
  0xef   : > { %v498_v27 = vpop.permute.xlu1 %497 }
  0xf0   : > { %v504_v55 = vmul.f32 %v503_v53, %v498_v27 }
  0xf2   : > { %v505_v34 = vadd.f32 %v504_v55, %v495_v30 }
  0xf4   : > { %v518_v38 = vpop.permute.xlu1 %517  ;;  %v515_v58 = vadd.f32 %v514_v29, %v505_v34 }
  0xf5   : > { %v524_v45 = vmul.f32 %v523_v40, %v518_v38 }
  0xf7   : > { %v525_v52 = vadd.f32 %v524_v45, %v515_v58 }
  0xf9   : > { %v528_v46 = vpop.permute.xlu1 %527 }
  0xfa   : > { %v534_v26 = vmul.f32 %v533_v62, %v528_v46 }
  0xfc   : > { %v535_v57 = vadd.f32 %v534_v26, %v525_v52 }
  0xfe   : > { %v548_v60 = vpop.permute.xlu1 %547  ;;  %v545_v61 = vadd.f32 %v544_v59, %v535_v57 }
  0xff   : > { %v554_v32 = vmul.f32 %v553_v44, %v548_v60 }
 0x101   : > { %v555_v63 = vadd.f32 %v554_v32, %v545_v61 }
 0x103   : > { %v558_v54 = vpop.permute.xlu1 %557 }
 0x104   : > { %v564_v39 = vmul.f32 %v563_v51, %v558_v54 }
 0x106   : > { %v565_v0 = vadd.f32 %v564_v39, %v555_v63 }
 0x108   : > { %v566_v1 = vsub.f32 0.0, %v565_v0 }
 0x10a   : > { %v567_v42 = vmul.f32 1.442695, %v566_v1 }
 0x10c   : > { %747 = vpow2.f32 %v567_v42 }
 0x116   : > { %v748_v2 = vpop.eup %747 }
 0x117   : > { %v569_v3 = vadd.f32 1.0, %v748_v2 }
 0x119   : > { %749 = vrcp.f32 %v569_v3 }
 0x123   : > { %v750_v48 = vpop.eup %749 }
 0x124   : > { %v571_v6 = vmul.f32 %v750_v48, %v981_v41 }
 0x126   : > { %572 = vst [vmem:[%s215_s13] sm:$0x1f] %v571_v6 }
 0x127   : > { %764 = shalt.err (!%p761_p3)
}
 0x128   : > { %s765_s6 = scalar_lea.hbm %s1055_s17, 128  ;;  %s769_s9 = scalar_lea.hbm %s1102_s5, 384 }
 0x129   : > { %p766_p4 = scmp.ne.s32.totalorder %s1055_s17, %s765_s6  ;;  %p770_p9 = scmp.lt.u32.totalorder %s1055_s17, %s1102_s5 }
 0x12a   : > { %p771_p10 = scmp.lt.u32.totalorder %s769_s9, %s765_s6  ;;  %p773_p12 = scmp.lt.u32.totalorder %s765_s6, %s1055_s17 }
 0x12b   : > { %p767_p7 = pnand %p766_p4, %p904_p5 }
 0x12c   : > { %p772_p11 = por %p771_p10, %p770_p9 }
 0x12d   : > { %p768_p8 = pneg %p767_p7 }
 0x12e   : > { %p774_p13 = por %p773_p12, %p772_p11 }
 0x130   : > { %p775_p0 = pnand %p774_p13, %p768_p8 }
 0x132   : > { %778 = shalt.err (!%p775_p0)
}
 0x133   : > { %656 = dma.vmem_to_hbm [thread:$0]  (%p904_p5), %s1057_s14, 128, %s1055_s17, %s574_s23  }
 0x134 PF: > { %p662_p1 = scmp.ge.s32.totalorder %s813_s21, 2  ;;  %s599_s12 = sand.u32 1, %s801_s18  }
 0x135   : > { %s600_s13 = scalar_lea.sflag [#allocation3], %s599_s12 }
 0x136   : > { %p659_p2 = pnand %p662_p1, %p908_p6 }
 0x138   : > { %796 = dma.done.wait (!%p659_p2), %s600_s13, 128  }
 0x139   : > { %798 = vsyncadd (!%p659_p2), %s600_s13, 4294967168  ;;  %p15_p3 = scmp.ge.s32.totalorder %s891_s24, 5   ;;  %s1105_s18 = smov %s805_s19 }
 0x13a   : > { %s1106_s19 = smov %s809_s20  ;;  %s1107_s20 = smov %s902_s27 }
 0x13b   : > { %s1108_s21 = smov %s891_s24  ;;  %17 = sbr.rel (!%p15_p3) target bundleno = 3 (0x3), region = 75 }
 0x142   :  { %605 = vsyncpa [#allocation3], 1 }
 0x143   :  { %607 = vsyncpa [#allocation3 + $0x1], 1 }

</bundles_post_ra>
